<compile_context>
chip_gen: v5e
topology: v5e:2x2
jax: 0.10.0
libtpu: 0.0.40
codegen_flags: <defaults>
</compile_context>

<pallas_src>
import functools

import jax
import jax.numpy as jnp
from jax import lax
from jax.experimental import pallas as pl
from jax.experimental.pallas import tpu as pltpu

_LANE = 128
_SUBLANE = 8


def _round_up(x, m):
    return ((x + m - 1) // m) * m


def _probe_kernel(x_ref, w_ref, b_ref, o_ref, *, normalize: bool, num_classes: int):
    x = x_ref[...].astype(jnp.float32)            # (TILE_B, D)
    w = w_ref[...].astype(jnp.float32)            # (D, C_pad)  -- VMEM-resident
    b = b_ref[...].astype(jnp.float32)            # (1, C_pad)  -- VMEM-resident

    if normalize:
        # F.normalize(x, p=2, dim=1): x / max(||x||, 1e-12)
        #   == x * rsqrt(max(||x||^2, 1e-24))      (rsqrt runs on the EUP slot)
        ss = jnp.sum(x * x, axis=1, keepdims=True)
        x = x * lax.rsqrt(jnp.maximum(ss, 1e-24))

    # Linear layer on the MXU with a lane-dense padded class dim. Padded class
    # lanes carry bias = -1e30, so they contribute exp(~-1e30) == 0 to the
    # softmax sum and never win the max.
    logits = jnp.dot(x, w, preferred_element_type=jnp.float32) + b   # (TILE_B, C_pad)

    # Numerically-stable log_softmax along the class axis.
    m = jnp.max(logits, axis=1, keepdims=True)
    shifted = logits - m
    lse = jnp.log(jnp.sum(jnp.exp(shifted), axis=1, keepdims=True))

    # Store only the real classes: HBM writeback is (TILE_B, num_classes).
    o_ref[...] = (shifted - lse)[:, :num_classes].astype(o_ref.dtype)


def prepare_probe_params(weight, bias):
    """One-time parameter prep (hoisted out of the per-call path).

    weight: (C, D) in PyTorch nn.Linear layout; bias: (C,).
    Returns:
      w_t: (D, C_pad) f32 -- transposed, zero-padded to a 128-lane multiple.
      b_p: (1, C_pad) f32 -- padded class lanes filled with -1e30.
    """
    C, D = weight.shape
    c_pad = _round_up(max(C, _LANE), _LANE)
    w_t = jnp.zeros((D, c_pad), jnp.float32).at[:, :C].set(
        weight.T.astype(jnp.float32))
    b_p = jnp.full((1, c_pad), -1e30, jnp.float32).at[0, :C].set(
        bias.astype(jnp.float32))
    return w_t, b_p


def _choose_tile_b(B, tile_b):
    """Batch tile: multiple of 8, as large as sensible, but >=4 grid steps for
    big batches so both v7x TensorCores get work (harmless on v5e/v6e)."""
    tile_b = max(_SUBLANE, min(_round_up(tile_b, _SUBLANE), _round_up(B, _SUBLANE)))
    four_way = _round_up(pl.cdiv(B, 4), _SUBLANE)
    if four_way >= 2048:   # never shrink tiles so far that step overhead dominates
        tile_b = min(tile_b, four_way)
    return tile_b


def chromatin_state_probe_forward(x, w_t, b_p, num_classes,
                                  normalize=False, tile_b=4096,
                                  out_dtype=jnp.float32):
    """x: (B, D); (w_t, b_p) from prepare_probe_params(); returns (B, num_classes).

    x may be bf16 (the kernel upcasts to f32 internally) and out_dtype may be
    bf16 to halve the dominant HBM streams if the caller tolerates it.
    """
    B, D = x.shape
    Dw, c_pad = w_t.shape
    assert Dw == D and b_p.shape == (1, c_pad) and num_classes <= c_pad

    tile_b = _choose_tile_b(B, tile_b)
    grid = (pl.cdiv(B, tile_b),)

    kernel = functools.partial(_probe_kernel, normalize=normalize,
                               num_classes=num_classes)

    cost = pl.CostEstimate(
        flops=2 * B * D * c_pad + 8 * B * c_pad,
        transcendentals=B * c_pad,                       # exp in softmax
        bytes_accessed=x.dtype.itemsize * B * D
        + 4 * (D * c_pad + c_pad)
        + jnp.dtype(out_dtype).itemsize * B * num_classes,
    )

    return pl.pallas_call(
        kernel,
        out_shape=jax.ShapeDtypeStruct((B, num_classes), out_dtype),
        grid=grid,
        in_specs=[
            pl.BlockSpec((tile_b, D), lambda i: (i, 0)),   # x: tiled along batch
            pl.BlockSpec((D, c_pad), lambda i: (0, 0)),    # W: resident across grid
            pl.BlockSpec((1, c_pad), lambda i: (0, 0)),    # b: resident across grid
        ],
        # Last block dim == full array last dim -> contiguous, unpadded writeback.
        out_specs=pl.BlockSpec((tile_b, num_classes), lambda i: (i, 0)),
        compiler_params=pltpu.CompilerParams(
            dimension_semantics=("parallel",),             # megacore split on v7x
        ),
        cost_estimate=cost,
    )(x, w_t, b_p)


def _reference_forward(x, weight, bias, normalize=False):
    if normalize:
        n = jnp.sqrt(jnp.sum(x * x, axis=1, keepdims=True))
        x = x / jnp.maximum(n, 1e-12)
    logits = x @ weight.T + bias
    return jax.nn.log_softmax(logits, axis=1)


# TODO(synk): training utilities (fit/train_batch/validate, NLLLoss, SGD) and the
# class-name encode/decode maps are host-side logic, not kernel work; only the
# forward pass is implemented as a Pallas kernel.

if __name__ == "__main__":
    key = jax.random.PRNGKey(0)
    k_x, k_w, k_b, k_x2 = jax.random.split(key, 4)

    batch = 8
    input_dim = 32
    output_dim = 18

    x = jax.random.normal(k_x, (batch, input_dim), dtype=jnp.float32)
    bound = 1.0 / (input_dim ** 0.5)
    weight = jax.random.uniform(k_w, (output_dim, input_dim),
                                minval=-bound, maxval=bound, dtype=jnp.float32)
    bias = jax.random.uniform(k_b, (output_dim,),
                              minval=-bound, maxval=bound, dtype=jnp.float32)

    # One-time parameter prep (transpose + lane padding hoisted out of forward).
    w_t, b_p = prepare_probe_params(weight, bias)

    # Small-batch case (single grid step).
    out = chromatin_state_probe_forward(x, w_t, b_p, output_dim, normalize=False)
    out = jax.block_until_ready(out)
    out_norm = chromatin_state_probe_forward(x, w_t, b_p, output_dim, normalize=True)
    out_norm = jax.block_until_ready(out_norm)

    ref = _reference_forward(x, weight, bias, normalize=False)
    ref_norm = _reference_forward(x, weight, bias, normalize=True)

    assert out.shape == (batch, output_dim)
    assert jnp.allclose(out, ref, atol=1e-5, rtol=1e-5)
    assert jnp.allclose(out_norm, ref_norm, atol=1e-5, rtol=1e-5)

    # Larger batch (the module's training batch_size=200) with a small tile to
    # exercise a multi-step grid and a partial final block.
    batch2 = 200
    x2 = jax.random.normal(k_x2, (batch2, input_dim), dtype=jnp.float32)
    out2 = chromatin_state_probe_forward(x2, w_t, b_p, output_dim,
                                         normalize=True, tile_b=64)
    out2 = jax.block_until_ready(out2)
    ref2 = _reference_forward(x2, weight, bias, normalize=True)
    assert out2.shape == (batch2, output_dim)
    assert jnp.allclose(out2, ref2, atol=1e-5, rtol=1e-5)

    print("KERNEL_OK")
</pallas_src>

<mosaic_0001>
module attributes {stable_mosaic.version = 11 : i64} {
  func.func @_probe_kernel(%arg0: i32, %arg1: memref<8x32xf32, #tpu.memory_space<vmem>>, %arg2: memref<32x128xf32, #tpu.memory_space<vmem>>, %arg3: memref<1x128xf32, #tpu.memory_space<vmem>>, %arg4: memref<8x18xf32, #tpu.memory_space<vmem>>) attributes {dimension_semantics = [#tpu.dimension_semantics<parallel>], iteration_bounds = array<i64: 1>, scalar_prefetch = 0 : i64, scratch_operands = 0 : i64, tpu.core_type = #tpu.core_type<tc>, window_params = [{transform_indices = @transform_0, window_bounds = array<i64: 8, 32>}, {pipeline_mode = #tpu.pipeline_mode<synchronous>, transform_indices = @transform_1, window_bounds = array<i64: 32, 128>}, {pipeline_mode = #tpu.pipeline_mode<synchronous>, transform_indices = @transform_2, window_bounds = array<i64: 1, 128>}, {transform_indices = @transform_3, window_bounds = array<i64: 8, 18>}]} {
    %c0 = arith.constant 0 : index
    %c0_0 = arith.constant 0 : index
    %0 = vector.load %arg1[%c0, %c0_0] : memref<8x32xf32, #tpu.memory_space<vmem>>, vector<8x32xf32>
    %c0_1 = arith.constant 0 : index
    %c0_2 = arith.constant 0 : index
    %1 = vector.load %arg2[%c0_1, %c0_2] : memref<32x128xf32, #tpu.memory_space<vmem>>, vector<32x128xf32>
    %c0_3 = arith.constant 0 : index
    %c0_4 = arith.constant 0 : index
    %2 = vector.load %arg3[%c0_3, %c0_4] : memref<1x128xf32, #tpu.memory_space<vmem>>, vector<1x128xf32>
    %cst = arith.constant dense<0.000000e+00> : vector<8x128xf32>
    %3 = tpu.matmul %0, %1, %cst {dimension_numbers = #tpu.dot_dimension_numbers<[1], [0], [0], [1], [0, 0, 1, 1], [], []>} : vector<8x32xf32>, vector<32x128xf32>, vector<8x128xf32> -> vector<8x128xf32>
    %4 = vector.broadcast %2 : vector<1x128xf32> to vector<8x128xf32>
    %5 = arith.addf %3, %4 : vector<8x128xf32>
    %cst_5 = arith.constant dense<0xFF800000> : vector<8xf32>
    %6 = vector.multi_reduction <maximumf>, %5, %cst_5 [1] : vector<8x128xf32> to vector<8xf32>
    %7 = vector.shape_cast %6 : vector<8xf32> to vector<8x1xf32>
    %8 = vector.broadcast %7 : vector<8x1xf32> to vector<8x128xf32>
    %9 = arith.subf %5, %8 : vector<8x128xf32>
    %10 = math.exp %9 : vector<8x128xf32>
    %cst_6 = arith.constant dense<0.000000e+00> : vector<8xf32>
    %11 = vector.multi_reduction <add>, %10, %cst_6 [1] : vector<8x128xf32> to vector<8xf32>
    %12 = vector.shape_cast %11 : vector<8xf32> to vector<8x1xf32>
    %13 = math.log %12 : vector<8x1xf32>
    %14 = vector.broadcast %13 : vector<8x1xf32> to vector<8x128xf32>
    %15 = arith.subf %9, %14 : vector<8x128xf32>
    %16 = vector.extract_strided_slice %15 {offsets = [0, 0], sizes = [8, 18], strides = [1, 1]} : vector<8x128xf32> to vector<8x18xf32>
    %c0_7 = arith.constant 0 : index
    %c0_8 = arith.constant 0 : index
    %17 = vector.load %arg4[%c0_7, %c0_8] : memref<8x18xf32, #tpu.memory_space<vmem>>, vector<8x18xf32>
    tpu.vector_store %arg4[%c0_7, %c0_8], %16 {strides = array<i32>} : memref<8x18xf32, #tpu.memory_space<vmem>>, vector<8x18xf32>,
    return
  }
  func.func @transform_0(%arg0: i32) -> (i32, i32) {
    %c0_i32 = arith.constant 0 : i32
    %c0_i32_0 = arith.constant 0 : i32
    return %arg0, %c0_i32 : i32, i32
  }
  func.func @transform_1(%arg0: i32) -> (i32, i32) {
    %c0_i32 = arith.constant 0 : i32
    %c0_i32_0 = arith.constant 0 : i32
    %c0_i32_1 = arith.constant 0 : i32
    return %c0_i32, %c0_i32_0 : i32, i32
  }
  func.func @transform_2(%arg0: i32) -> (i32, i32) {
    %c0_i32 = arith.constant 0 : i32
    %c0_i32_0 = arith.constant 0 : i32
    %c0_i32_1 = arith.constant 0 : i32
    return %c0_i32, %c0_i32_0 : i32, i32
  }
  func.func @transform_3(%arg0: i32) -> (i32, i32) {
    %c0_i32 = arith.constant 0 : i32
    %c0_i32_0 = arith.constant 0 : i32
    return %arg0, %c0_i32 : i32, i32
  }
}

</mosaic_0001>

<bundles_post_ra>
// kernel: tpu_custom_call.1
= control target key start
LH: loop header
LB: loop body
LE: loop exit
PB: predicated region body
PF: predicated region fallthrough
CT: control target
= control target key end

     0   :  { %8 = vsyncpa [#allocation3], 0  ;;  %s234_s0 = inlined_call_operand.hbm [shape: f32[8,32], index: 0, kind: input, shape index: {}]   ;;  %s235_s1 = inlined_call_operand.hbm [shape: f32[32,128], index: 1, kind: input, shape index: {}]   ;;  %s236_s2 = inlined_call_operand.vmem [shape: f32[1,128], index: 2, kind: input, shape index: {}]   ;;  %s237_s3 = inlined_call_operand.hbm [shape: f32[8,18], index: 3, kind: output, shape index: {}]  }
   0x1   :  { %9 = vsyncpa [#allocation6], 0 }
   0x2   :  { %10 = vsyncpa [#allocation4], 0  ;;  %s16_s14 = sshll.u32 %s234_s0, 4  ;;  %s197_s15 = smov [#allocation2]   ;;  %s17_s14 = int_to_ptr.hbm [resolvable:$true] %s16_s14 }
   0x3   :  { %s18_s16 = sshll.u32 %s197_s15, 4  ;;  %s26_s19 = sshll.u32 %s235_s1, 4  ;;  %s19_s16 = int_to_ptr.vmem [resolvable:$true] %s18_s16  ;;  %s27_s19 = int_to_ptr.hbm [resolvable:$true] %s26_s19 }
   0x4   :  { %21 = dma.hbm_to_vmem [thread:$0]  %s17_s14, 128, %s19_s16, [#allocation3]  }
   0x5   :  { %s198_s20 = smov [#allocation5]   ;;  %s199_s22 = smov 128  }
   0x6   :  { %s28_s21 = sshll.u32 %s198_s20, 4  ;;  %s200_s23 = smov 8   ;;  %s29_s21 = int_to_ptr.vmem [resolvable:$true] %s28_s21 }
   0x7   :  { %34 = dma.hbm_to_vmem [thread:$0]  %s27_s19, 512, %s29_s21, [#allocation6], %s199_s22, %s199_s22, %s200_s23  }
   0x8   :  { %191 = dma.done.wait [#allocation3], 128  }
   0x9   :  { %192 = vsyncadd [#allocation3], 4294967168 }
   0xa   :  { %193 = dma.done.wait [#allocation6], 512  }
   0xb   :  { %194 = vsyncadd [#allocation6], 4294966784  ;;  %v49_v0 = vld [vmem:[#allocation5 + $0x18] sm:$0xff]  ;;  %v48_v1 = vld [vmem:[#allocation5 + $0x10] sm:$0xff]  ;;  %vm54_vm0 = vcmask 261120   ;;  %s201_s24 = smov [#allocation7]  }
   0xc   :  { %70 = vmatpush.msra.mxu0 %v49_v0  ;;  %v47_v2 = vld [vmem:[#allocation5 + $0x8] sm:$0xff]  ;;  %v46_v3 = vld [vmem:[#allocation5] sm:$0xff]  ;;  %v45_v4 = vld [vmem:[#allocation2] sm:$0xff]  ;;  %s95_s25 = sshll.u32 %s201_s24, 4  ;;  %s97_s28 = sshll.u32 %s237_s3, 4  ;;  %vm88_vm1 = vcmask 146432   ;;  %s96_s25 = int_to_ptr.vmem [resolvable:$true] %s95_s25  ;;  %s98_s28 = int_to_ptr.hbm [resolvable:$true] %s97_s28 }
   0xd   :  { %v114_v5 = vld [vmem:[%s236_s2] ss:$0 sm:$0xff] }
   0xe   :  { %71 = vmatpush.msra.mxu0 %v48_v1 }
  0x10   :  { %72 = vmatpush.msra.mxu0 %v47_v2 }
  0x12   :  { %73 = vmatpush.msra.mxu0 %v46_v3 }
  0x13   :  { %108 = vmatmul.msk.f32.vlgmr.msra.gmra.mxu0 %vm54_vm0, %v45_v4 }
  0x90   :  { %v75_v6 = vpop.f32.mrf.mxu0 }
  0x91   :  { %v76_v7 = vadd.f32 %v114_v5, %v75_v6 }
  0x93   :  { %78 = vmax.xlane.f32.xlu0 %v76_v7 }
 0x106   :  { %v79_v8 = vpop.xlane.xlu0 %78 }
 0x107   :  { %v80_v9 = vsub.f32 %v76_v7, %v79_v8 }
 0x109   :  { %v81_v10 = vmul.f32 1.442695, %v80_v9 }
 0x10b   :  { %115 = vpow2.f32 %v81_v10 }
 0x111   :  { %v116_v11 = vpop.eup %115 }
 0x112   :  { %83 = vadd.xlane.f32.xlu0 %v116_v11 }
 0x185   :  { %v84_v12 = vpop.xlane.xlu0 %83 }
 0x186   :  { %117 = vlog2.f32 %v84_v12 }
 0x18c   :  { %v118_v13 = vpop.eup %117 }
 0x18d   :  { %v86_v14 = vmul.f32 0.6931472, %v118_v13 }
 0x18f   :  { %v87_v15 = vsub.f32 %v80_v9, %v86_v14 }
 0x191   :  { %89 = vst.msk [vmem:[#allocation7] sm:$0xff] %vm88_vm1, %v87_v15 }
 0x192   :  { %100 = dma.vmem_to_hbm [thread:$0]  %s96_s25, 128, %s98_s28, [#allocation4]  }
 0x193   :  { %195 = dma.done.wait [#allocation4], 128  }
 0x194   :  { %196 = vsyncadd [#allocation4], 4294967168 }
 0x195   :  { %105 = vsyncpa [#allocation3], 1 }
 0x196   :  { %106 = vsyncpa [#allocation6], 1 }
 0x197   :  { %107 = vsyncpa [#allocation4], 1 }

</bundles_post_ra>
